<compile_context>
chip_gen: v7x
topology: tpu7x:2x2x1
jax: 0.10.0
libtpu: 0.0.40
codegen_flags: <defaults>
</compile_context>

<pallas_src>
import functools

import jax
import jax.numpy as jnp
from jax.experimental import pallas as pl
from jax.experimental.pallas import tpu as pltpu


def _round_up(x, m):
    return (x + m - 1) // m * m


def _ln_epilogue(h, g, beta, eps):
    """Two-pass LayerNorm over the last dim of an f32 block (numerically safe)."""
    inv_n = 1.0 / h.shape[-1]
    mean = jnp.sum(h, axis=-1, keepdims=True) * inv_n
    d = h - mean
    var = jnp.sum(d * d, axis=-1, keepdims=True) * inv_n
    return d * jax.lax.rsqrt(var + eps) * g + beta


# --------------------------------------------------------------------------
# Kernels
# --------------------------------------------------------------------------
def _cpmant_output_kernel_1k(eps, x_ref, w_ref, b_ref, res_ref, g_ref,
                             beta_ref, o_ref):
    """Single K-tile: dense + bias + residual + LayerNorm in one shot."""
    # TODO(synk): dropout is identity in eval mode; training-mode dropout is
    # not implemented.
    h = jnp.dot(x_ref[...], w_ref[...], preferred_element_type=jnp.float32)
    h = (h + b_ref[...].astype(jnp.float32)
         + res_ref[...].astype(jnp.float32))
    y = _ln_epilogue(h,
                     g_ref[...].astype(jnp.float32),
                     beta_ref[...].astype(jnp.float32),
                     eps)
    o_ref[...] = y.astype(o_ref.dtype)


def _cpmant_output_body_mk(eps, x_ref, w_ref, b_ref, res_ref, g_ref, beta_ref,
                           o_ref, acc_ref):
    """Multi K-tile reduction body; acc_ref may alias o_ref (f32 outputs)."""
    k = pl.program_id(1)

    @pl.when(k == 0)
    def _():
        acc_ref[...] = jnp.zeros_like(acc_ref)

    acc_ref[...] += jnp.dot(x_ref[...], w_ref[...],
                            preferred_element_type=jnp.float32)

    @pl.when(k == pl.num_programs(1) - 1)
    def _():
        h = (acc_ref[...]
             + b_ref[...].astype(jnp.float32)
             + res_ref[...].astype(jnp.float32))
        y = _ln_epilogue(h,
                         g_ref[...].astype(jnp.float32),
                         beta_ref[...].astype(jnp.float32),
                         eps)
        o_ref[...] = y.astype(o_ref.dtype)


def _cpmant_output_kernel_mk_inplace(eps, x_ref, w_ref, b_ref, res_ref, g_ref,
                                     beta_ref, o_ref):
    # f32 output: accumulate directly into the resident output block.
    _cpmant_output_body_mk(eps, x_ref, w_ref, b_ref, res_ref, g_ref, beta_ref,
                           o_ref, o_ref)


def _cpmant_output_kernel_mk_scratch(eps, x_ref, w_ref, b_ref, res_ref, g_ref,
                                     beta_ref, o_ref, acc_ref):
    _cpmant_output_body_mk(eps, x_ref, w_ref, b_ref, res_ref, g_ref, beta_ref,
                           o_ref, acc_ref)


# --------------------------------------------------------------------------
# Tile selection (generation-aware through the VMEM budget)
# --------------------------------------------------------------------------
def _vmem_budget_bytes():
    try:
        cap = int(pltpu.get_tpu_info().vmem_capacity_bytes)
    except Exception:
        cap = 64 * 1024 * 1024  # conservative (v7x-sized) fallback
    return int(cap * 0.78)


def _select_tiles(M, I, H, x_bytes, w_bytes, r_bytes, o_bytes, vmem_budget):
    """Pick (tm, tk).  tk == I, or a lane-aligned divisor of I (no padding),
    or (rare fallback) a generic multiple of 128 that requires zero-padding."""

    def need(tm, tk):
        # double-buffered inputs/outputs + f32 accumulator (conservative).
        return (2 * (tm * tk * x_bytes + tk * H * w_bytes
                     + tm * H * r_bytes + 3 * H * 4)
                + 2 * tm * H * o_bytes
                + tm * H * 4)

    tk_divisors = [d for d in range(128, I + 1, 128) if I % d == 0]
    tk_generic = [t for t in (1024, 512, 256, 128) if t < I and I % t != 0]
    tk_cands = [I] + sorted(tk_divisors, reverse=True) + tk_generic
    seen = set()
    tk_cands = [t for t in tk_cands if not (t in seen or seen.add(t))]

    m_cap = _round_up(M, 8)
    if M > 8:
        # keep >= 2 row tiles so the "parallel" M axis can split across cores.
        m_cap = min(m_cap, _round_up((M + 1) // 2, 8))
    tm_cands = sorted(
        {min(t, m_cap) for t in (1024, 768, 512, 384, 256, 192, 128,
                                 64, 32, 16, 8)},
        reverse=True)

    tk_floor = min(I, 512)
    best = None
    for tm in tm_cands:
        for tk in tk_cands:
            if need(tm, tk) <= vmem_budget:
                if tk >= tk_floor:
                    return tm, tk
                if best is None:
                    best = (tm, tk)
                break
    if best is None:
        best = (tm_cands[-1], tk_cands[-1])
    return best


# --------------------------------------------------------------------------
# Wrapper
# --------------------------------------------------------------------------
def cpmant_output(hidden_states, input_tensor, w, b, gamma, beta,
                  eps=1e-12, matmul_dtype=None):
    """hidden_states: (B, S, I); input_tensor: (B, S, H); w: (I, H) (already W^T);
    b / gamma / beta: (H,).  matmul_dtype=jnp.bfloat16 runs the MXU in bf16."""
    B, S, I = hidden_states.shape
    H = input_tensor.shape[-1]
    M = B * S
    out_dtype = hidden_states.dtype
    eps = float(eps)

    x2d = hidden_states.reshape(M, I)
    res2d = input_tensor.reshape(M, H)
    if matmul_dtype is not None:
        x2d = x2d.astype(matmul_dtype)
        w = w.astype(matmul_dtype)

    x_bytes = x2d.dtype.itemsize
    w_bytes = w.dtype.itemsize
    r_bytes = res2d.dtype.itemsize
    o_bytes = jnp.dtype(out_dtype).itemsize

    vmem_budget = _vmem_budget_bytes()
    tm, tk = _select_tiles(M, I, H, x_bytes, w_bytes, r_bytes, o_bytes,
                           vmem_budget)

    # K padding only in the rare case where tk does not divide I (zero K-pad
    # contributes nothing to the matmul).  The M axis uses partial blocks.
    Ip = _round_up(I, tk)
    if Ip != I:
        x2d = jnp.pad(x2d, ((0, 0), (0, Ip - I)))
        w = jnp.pad(w, ((0, Ip - I), (0, 0)))

    grid_m = pl.cdiv(M, tm)
    num_k = Ip // tk

    b2d = b.reshape(1, H)
    g2d = gamma.reshape(1, H)
    beta2d = beta.reshape(1, H)

    if num_k == 1:
        tk_eff = Ip
        kernel = functools.partial(_cpmant_output_kernel_1k, eps)
        grid = (grid_m,)
        in_specs = [
            pl.BlockSpec((tm, Ip), lambda i: (i, 0)),   # activations
            pl.BlockSpec((Ip, H), lambda i: (0, 0)),    # dense weight (W^T)
            pl.BlockSpec((1, H), lambda i: (0, 0)),     # dense bias
            pl.BlockSpec((tm, H), lambda i: (i, 0)),    # residual input
            pl.BlockSpec((1, H), lambda i: (0, 0)),     # LN gamma
            pl.BlockSpec((1, H), lambda i: (0, 0)),     # LN beta
        ]
        out_specs = pl.BlockSpec((tm, H), lambda i: (i, 0))
        scratch_shapes = []
        dims = ("parallel",)
    else:
        tk_eff = tk
        if jnp.dtype(out_dtype) == jnp.float32:
            kernel = functools.partial(_cpmant_output_kernel_mk_inplace, eps)
            scratch_shapes = []
        else:
            kernel = functools.partial(_cpmant_output_kernel_mk_scratch, eps)
            scratch_shapes = [pltpu.VMEM((tm, H), jnp.float32)]
        grid = (grid_m, num_k)
        in_specs = [
            pl.BlockSpec((tm, tk), lambda i, k: (i, k)),   # activations
            pl.BlockSpec((tk, H), lambda i, k: (k, 0)),    # dense weight (W^T)
            pl.BlockSpec((1, H), lambda i, k: (0, 0)),     # dense bias
            pl.BlockSpec((tm, H), lambda i, k: (i, 0)),    # residual input
            pl.BlockSpec((1, H), lambda i, k: (0, 0)),     # LN gamma
            pl.BlockSpec((1, H), lambda i, k: (0, 0)),     # LN beta
        ]
        out_specs = pl.BlockSpec((tm, H), lambda i, k: (i, 0))
        dims = ("parallel", "arbitrary")

    need = (2 * (tm * tk_eff * x_bytes + tk_eff * H * w_bytes
                 + tm * H * r_bytes + 3 * H * 4)
            + 2 * tm * H * o_bytes
            + (tm * H * 4 if scratch_shapes else 0))
    vmem_limit = int(min(max(int(need * 1.3), 32 * 1024 * 1024), vmem_budget))
    vmem_limit = int(max(vmem_limit, need + 2 * 1024 * 1024))

    cost = pl.CostEstimate(
        flops=2 * M * I * H,
        transcendentals=M,
        bytes_accessed=int(M * I * x_bytes
                           + grid_m * I * H * w_bytes   # weight re-streamed per M tile
                           + M * H * r_bytes + M * H * o_bytes + 3 * H * 4),
    )

    out2d = pl.pallas_call(
        kernel,
        out_shape=jax.ShapeDtypeStruct((M, H), out_dtype),
        grid=grid,
        in_specs=in_specs,
        out_specs=out_specs,
        scratch_shapes=scratch_shapes,
        compiler_params=pltpu.CompilerParams(
            dimension_semantics=dims,
            vmem_limit_bytes=vmem_limit,
        ),
        cost_estimate=cost,
    )(x2d, w, b2d, res2d, g2d, beta2d)

    return out2d.reshape(B, S, H)


def _reference(hidden_states, input_tensor, w, b, gamma, beta, eps=1e-12):
    h = jnp.einsum("bsi,ih->bsh", hidden_states, w) + b
    h = h + input_tensor
    mean = jnp.mean(h, axis=-1, keepdims=True)
    var = jnp.mean((h - mean) ** 2, axis=-1, keepdims=True)
    return (h - mean) * jax.lax.rsqrt(var + eps) * gamma + beta


if __name__ == "__main__":
    # Small CpmAnt-like config: batch=2, seq=8, intermediate_size=64, hidden_size=32.
    B, S, I, H = 2, 8, 64, 32
    eps = 1e-12

    key = jax.random.PRNGKey(0)
    k1, k2, k3, k4 = jax.random.split(key, 4)

    hidden_states = jax.random.normal(k1, (B, S, I), dtype=jnp.float32)
    input_tensor = jax.random.normal(k2, (B, S, H), dtype=jnp.float32)

    # Deterministic "parameters" (nn.Linear(I, H) stored as W^T, nn.LayerNorm(H)).
    w = jax.random.normal(k3, (I, H), dtype=jnp.float32) * (1.0 / jnp.sqrt(I))
    b = jax.random.normal(k4, (H,), dtype=jnp.float32) * 0.02
    gamma = jnp.ones((H,), dtype=jnp.float32)
    beta = jnp.zeros((H,), dtype=jnp.float32)

    out = cpmant_output(hidden_states, input_tensor, w, b, gamma, beta, eps)
    out = jax.block_until_ready(out)

    ref = _reference(hidden_states, input_tensor, w, b, gamma, beta, eps)
    assert out.shape == (B, S, H)
    assert jnp.allclose(out, ref, atol=1e-5, rtol=1e-5), "mismatch vs reference"

    print("KERNEL_OK")
</pallas_src>

<mosaic_0001>
module attributes {stable_mosaic.version = 11 : i64} {
  func.func @_cpmant_output_kernel_1k(%arg0: i32, %arg1: memref<8x64xf32, #tpu.memory_space<vmem>>, %arg2: memref<64x32xf32, #tpu.memory_space<vmem>>, %arg3: memref<1x32xf32, #tpu.memory_space<vmem>>, %arg4: memref<8x32xf32, #tpu.memory_space<vmem>>, %arg5: memref<1x32xf32, #tpu.memory_space<vmem>>, %arg6: memref<1x32xf32, #tpu.memory_space<vmem>>, %arg7: memref<8x32xf32, #tpu.memory_space<vmem>>) attributes {dimension_semantics = [#tpu.dimension_semantics<parallel>], iteration_bounds = array<i64: 2>, scalar_prefetch = 0 : i64, scratch_operands = 0 : i64, tpu.core_type = #tpu.core_type<tc>, window_params = [{transform_indices = @transform_0, window_bounds = array<i64: 8, 64>}, {pipeline_mode = #tpu.pipeline_mode<synchronous>, transform_indices = @transform_1, window_bounds = array<i64: 64, 32>}, {pipeline_mode = #tpu.pipeline_mode<synchronous>, transform_indices = @transform_2, window_bounds = array<i64: 1, 32>}, {transform_indices = @transform_3, window_bounds = array<i64: 8, 32>}, {pipeline_mode = #tpu.pipeline_mode<synchronous>, transform_indices = @transform_4, window_bounds = array<i64: 1, 32>}, {pipeline_mode = #tpu.pipeline_mode<synchronous>, transform_indices = @transform_5, window_bounds = array<i64: 1, 32>}, {transform_indices = @transform_6, window_bounds = array<i64: 8, 32>}]} {
    %c0 = arith.constant 0 : index
    %c0_0 = arith.constant 0 : index
    %0 = vector.load %arg1[%c0, %c0_0] : memref<8x64xf32, #tpu.memory_space<vmem>>, vector<8x64xf32>
    %c0_1 = arith.constant 0 : index
    %c0_2 = arith.constant 0 : index
    %1 = vector.load %arg2[%c0_1, %c0_2] : memref<64x32xf32, #tpu.memory_space<vmem>>, vector<64x32xf32>
    %cst = arith.constant dense<0.000000e+00> : vector<8x32xf32>
    %2 = tpu.matmul %0, %1, %cst {dimension_numbers = #tpu.dot_dimension_numbers<[1], [0], [0], [1], [0, 0, 1, 1], [], []>} : vector<8x64xf32>, vector<64x32xf32>, vector<8x32xf32> -> vector<8x32xf32>
    %c0_3 = arith.constant 0 : index
    %c0_4 = arith.constant 0 : index
    %3 = vector.load %arg3[%c0_3, %c0_4] : memref<1x32xf32, #tpu.memory_space<vmem>>, vector<1x32xf32>
    %4 = vector.broadcast %3 : vector<1x32xf32> to vector<8x32xf32>
    %5 = arith.addf %2, %4 : vector<8x32xf32>
    %c0_5 = arith.constant 0 : index
    %c0_6 = arith.constant 0 : index
    %6 = vector.load %arg4[%c0_5, %c0_6] : memref<8x32xf32, #tpu.memory_space<vmem>>, vector<8x32xf32>
    %7 = arith.addf %5, %6 : vector<8x32xf32>
    %c0_7 = arith.constant 0 : index
    %c0_8 = arith.constant 0 : index
    %8 = vector.load %arg5[%c0_7, %c0_8] : memref<1x32xf32, #tpu.memory_space<vmem>>, vector<1x32xf32>
    %c0_9 = arith.constant 0 : index
    %c0_10 = arith.constant 0 : index
    %9 = vector.load %arg6[%c0_9, %c0_10] : memref<1x32xf32, #tpu.memory_space<vmem>>, vector<1x32xf32>
    %cst_11 = arith.constant dense<0.000000e+00> : vector<8xf32>
    %10 = vector.multi_reduction <add>, %7, %cst_11 [1] : vector<8x32xf32> to vector<8xf32>
    %11 = vector.shape_cast %10 : vector<8xf32> to vector<8x1xf32>
    %cst_12 = arith.constant 3.125000e-02 : f32
    %12 = vector.broadcast %cst_12 : f32 to vector<8x1xf32>
    %13 = arith.mulf %11, %12 : vector<8x1xf32>
    %14 = vector.broadcast %13 : vector<8x1xf32> to vector<8x32xf32>
    %15 = arith.subf %7, %14 : vector<8x32xf32>
    %16 = arith.mulf %15, %15 : vector<8x32xf32>
    %cst_13 = arith.constant dense<0.000000e+00> : vector<8xf32>
    %17 = vector.multi_reduction <add>, %16, %cst_13 [1] : vector<8x32xf32> to vector<8xf32>
    %18 = vector.shape_cast %17 : vector<8xf32> to vector<8x1xf32>
    %cst_14 = arith.constant 3.125000e-02 : f32
    %19 = vector.broadcast %cst_14 : f32 to vector<8x1xf32>
    %20 = arith.mulf %18, %19 : vector<8x1xf32>
    %cst_15 = arith.constant 9.99999996E-13 : f32
    %21 = vector.broadcast %cst_15 : f32 to vector<8x1xf32>
    %22 = arith.addf %20, %21 : vector<8x1xf32>
    %23 = math.rsqrt %22 : vector<8x1xf32>
    %24 = vector.broadcast %23 : vector<8x1xf32> to vector<8x32xf32>
    %25 = arith.mulf %15, %24 : vector<8x32xf32>
    %26 = vector.broadcast %8 : vector<1x32xf32> to vector<8x32xf32>
    %27 = arith.mulf %25, %26 : vector<8x32xf32>
    %28 = vector.broadcast %9 : vector<1x32xf32> to vector<8x32xf32>
    %29 = arith.addf %27, %28 : vector<8x32xf32>
    %c0_16 = arith.constant 0 : index
    %c0_17 = arith.constant 0 : index
    %30 = vector.load %arg7[%c0_16, %c0_17] : memref<8x32xf32, #tpu.memory_space<vmem>>, vector<8x32xf32>
    tpu.vector_store %arg7[%c0_16, %c0_17], %29 {strides = array<i32>} : memref<8x32xf32, #tpu.memory_space<vmem>>, vector<8x32xf32>,
    return
  }
  func.func @transform_0(%arg0: i32) -> (i32, i32) {
    %c0_i32 = arith.constant 0 : i32
    %c0_i32_0 = arith.constant 0 : i32
    return %arg0, %c0_i32 : i32, i32
  }
  func.func @transform_1(%arg0: i32) -> (i32, i32) {
    %c0_i32 = arith.constant 0 : i32
    %c0_i32_0 = arith.constant 0 : i32
    %c0_i32_1 = arith.constant 0 : i32
    return %c0_i32, %c0_i32_0 : i32, i32
  }
  func.func @transform_2(%arg0: i32) -> (i32, i32) {
    %c0_i32 = arith.constant 0 : i32
    %c0_i32_0 = arith.constant 0 : i32
    %c0_i32_1 = arith.constant 0 : i32
    return %c0_i32, %c0_i32_0 : i32, i32
  }
  func.func @transform_3(%arg0: i32) -> (i32, i32) {
    %c0_i32 = arith.constant 0 : i32
    %c0_i32_0 = arith.constant 0 : i32
    return %arg0, %c0_i32 : i32, i32
  }
  func.func @transform_4(%arg0: i32) -> (i32, i32) {
    %c0_i32 = arith.constant 0 : i32
    %c0_i32_0 = arith.constant 0 : i32
    %c0_i32_1 = arith.constant 0 : i32
    return %c0_i32, %c0_i32_0 : i32, i32
  }
  func.func @transform_5(%arg0: i32) -> (i32, i32) {
    %c0_i32 = arith.constant 0 : i32
    %c0_i32_0 = arith.constant 0 : i32
    %c0_i32_1 = arith.constant 0 : i32
    return %c0_i32, %c0_i32_0 : i32, i32
  }
  func.func @transform_6(%arg0: i32) -> (i32, i32) {
    %c0_i32 = arith.constant 0 : i32
    %c0_i32_0 = arith.constant 0 : i32
    return %arg0, %c0_i32 : i32, i32
  }
}

</mosaic_0001>

<bundles_post_ra>
// kernel: tpu_custom_call.1
= control target key start
LH: loop header
LB: loop body
LE: loop exit
PB: predicated region body
PF: predicated region fallthrough
CT: control target
= control target key end

     0   :  { %11 = vsyncpa [#allocation3], 0  ;;  %s813_s0 = inlined_call_operand.vmem [shape: f32[16,64], index: 0, kind: input, shape index: {}]   ;;  %s814_s1 = inlined_call_operand.vmem [shape: f32[64,32], index: 1, kind: input, shape index: {}]   ;;  %s815_s2 = inlined_call_operand.vmem [shape: f32[1,32], index: 2, kind: input, shape index: {}]   ;;  %s816_s3 = inlined_call_operand.vmem [shape: f32[16,32], index: 3, kind: input, shape index: {}]   ;;  %s817_s4 = inlined_call_operand.vmem [shape: f32[1,32], index: 4, kind: input, shape index: {}]   ;;  %s818_s5 = inlined_call_operand.vmem [shape: f32[1,32], index: 5, kind: input, shape index: {}]   ;;  %s819_s6 = inlined_call_operand.hbm [shape: f32[16,32], index: 6, kind: output, shape index: {}]  }
   0x1   :  { %13 = vsyncpa [#allocation3 + $0x1], 0  ;;  %s674_s21 = smov 0   ;;  %s676_s22 = smov 0  }
   0x2   :  { %s678_s23 = smov 0   ;;  %s680_s24 = smov 0  }
   0x3 LB: > { %s695_s25 = sadd.s32 4294967295, %s633_s24   ;;  %s472_s26 = sadd.s32 4294967294, %s633_s24   ;;  %s633_s24 = sphi %s680_s24, %s825_s24   ;;  %s629_s23 = sphi %s678_s23, %s824_s23   ;;  %s625_s22 = sphi %s676_s22, %s823_s22   ;;  %s621_s21 = sphi %s674_s21, %s822_s21  }
   0x4   : > { %s699_s27 = sadd.s32 1, %s633_s24   ;;  %s162_s28 = sadd.s32 1, %s629_s23 }
   0x5   : > { %s159_s29 = ssub.s32 %s633_s24, %s699_s27  ;;  %p172_p0 = scmp.ne.s32.totalorder %s629_s23, %s625_s22 }
   0x6   : > { %p160_p1 = scmp.eq.s32.totalorder %s159_s29, 0  ;;  %p173_p2 = scmp.eq.s32.totalorder %s695_s25, 1 }
   0x7   : > { %p178_p3 = scmp.ne.s32.totalorder %s625_s22, %s621_s21  ;;  %p179_p4 = scmp.eq.s32.totalorder %s472_s26, 1 }
   0x8   : > { %s710_s30 = scalar_select %p160_p1, %s629_s23, %s162_s28  }
   0x9   : > { %p712_p5 = por %p173_p2, %p172_p0  ;;  %p716_p6 = por %p179_p4, %p178_p3 }
   0xa   : > { %p475_p7 = scmp.ge.s32.totalorder %s633_s24, 1  ;;  %p223_p8 = scmp.lt.s32.totalorder %s633_s24, 3 }
   0xc   : > { %p224_p9 = pnand %p475_p7, %p223_p8 }
   0xd   : > { %v265_v0 = vld [vmem:[%s814_s1] sm:$0xff] (!%p224_p9)  ;;  %v266_v1 = vld [vmem:[%s814_s1 + $0x8] sm:$0xff] (!%p224_p9)  ;;  %v267_v2 = vld [vmem:[%s814_s1 + $0x10] sm:$0xff] (!%p224_p9)  ;;  %v635_v3 = vmov (!%p224_p9), 0.0|0.0   ;;  %vm636_vm0 = vmmov (!%p224_p9), 0   ;;  %v637_v6 = vmov (!%p224_p9), 0.0  }
   0xe   : > { %227 = sbr.rel (%p224_p9) target bundleno = 574 (0x23e), region = 44  ;;  %515 = vmatprep.subr.bf16.mxu0 (!%p224_p9), %v635_v3  ;;  %v516_v4 = vpack.c.bf16 (!%p224_p9), %v266_v1, %v265_v0  ;;  %v268_v5 = vld [vmem:[%s814_s1 + $0x18] sm:$0xff] (!%p224_p9)  ;;  %512 = vmatprep.mubr.msk.f32.mxu0 (!%p224_p9), %vm636_vm0, %v637_v6  ;;  %p256_p10 = scmp.lt.s32.totalorder (!%p224_p9), %s695_s25, 1  ;;  %v269_v8 = vld [vmem:[%s814_s1 + $0x20] sm:$0xff] (!%p224_p9)  ;;  %v270_v9 = vld [vmem:[%s814_s1 + $0x28] sm:$0xff] (!%p224_p9)  ;;  %vm280_vm1 = vcmask (!%p224_p9), 523264  }
   0xf   : > { %v519_v7 = vpack.c.bf16 (!%p224_p9), %v268_v5, %v267_v2  ;;  %v522_v10 = vpack.c.bf16 (!%p224_p9), %v270_v9, %v269_v8  ;;  %v271_v11 = vld [vmem:[%s814_s1 + $0x30] sm:$0xff] (!%p224_p9)  ;;  %v272_v12 = vld [vmem:[%s814_s1 + $0x38] sm:$0xff] (!%p224_p9)  ;;  %v479_v15 = vld [vmem:[%s815_s2] ss:$0 sm:$0xff] (!%p224_p9)  ;;  %vm358_vm2 = vcmask (!%p224_p9), 261120   ;;  %s253_s20 = sand.u32 (!%p224_p9), 1, %s625_s22  }
  0x10   : > { %517 = vmatpush3.bf16.msra.mxu0 (!%p224_p9), %v516_v4  ;;  %v525_v13 = vpack.c.bf16 (!%p224_p9), %v272_v12, %v271_v11  ;;  %v481_v31 = vld [vmem:[%s817_s4] ss:$0 sm:$0xff] (!%p224_p9) }
  0x11   : > { %518 = vmatprep.subr.bf16.mxu0 (!%p224_p9), %v635_v3  ;;  %v482_v33 = vld [vmem:[%s818_s5] ss:$0 sm:$0xff] (!%p224_p9) }
  0x14   : > { %520 = vmatpush3.bf16.msra.mxu0 (!%p224_p9), %v519_v7 }
  0x15   : > { %s257_s26 = scalar_select %p256_p10, %s695_s25, 1  ;;  %521 = vmatprep.subr.bf16.mxu0 %v635_v3 }
  0x17   : > { %s477_s11 = sshll.u32 %s257_s26, 3  ;;  %s476_s26 = sshll.u32 %s253_s20, 3 }
  0x18   : > { %523 = vmatpush3.bf16.msra.mxu0 %v522_v10  ;;  %s259_s14 = scalar_lea.vmem %s813_s0, %s477_s11  ;;  %s263_s17 = scalar_lea.vmem %s816_s3, %s477_s11 }
  0x19   : > { %524 = vmatprep.subr.bf16.mxu0 %v635_v3  ;;  %v264_v14 = vld [vmem:[%s259_s14] sm:$0xff]  ;;  %s484_s11 = sshll.u32 %s695_s25, 7  ;;  %s255_s12 = scalar_lea.vmem [#allocation2], %s476_s26 }
  0x1a   : > { %v354_v17 = vld [vmem:[%s263_s17] sm:$0xff]  ;;  %s401_s13 = sshll.u32 %s255_s12, 4  ;;  %s770_s16 = scalar_lea.hbm %s819_s6, %s484_s11  ;;  %s772_s13 = int_to_ptr.vmem [resolvable:$true] %s401_s13 }
  0x1b   : > { %s388_s17 = scalar_lea.sflag [#allocation3], %s253_s20  ;;  %s571_s18 = scalar_lea.vmem %s772_s13, 128 }
  0x1c   : > { %526 = vmatpush3.bf16.msra.mxu0 %v525_v13  ;;  %p572_p11 = scmp.ne.s32.totalorder %s772_s13, %s571_s18  ;;  %s638_s25 = smov [#allocation2]  }
  0x1d   : > { %s575_s19 = sshll.u32 %s638_s25, 4  ;;  %s576_s19 = int_to_ptr.vmem [resolvable:$false] %s575_s19 }
  0x1e   : > { %p573_p12 = pnand %p572_p11, %p712_p5  ;;  %s577_s26 = scalar_lea.vmem %s576_s19, 256 }
  0x1f   : > { %513 = vmatmul.mubr.msk.f32.vlgmr.msra.gmra.mrb[0].mxu0 %vm280_vm1, %v264_v14  ;;  %p578_p0 = scmp.lt.s32.totalorder %s772_s13, %s576_s19  ;;  %p579_p1 = scmp.lt.s32.totalorder %s577_s26, %s571_s18 }
  0x20   : > { %p574_p13 = pneg %p573_p12 }
  0x21   : > { %p580_p2 = por %p579_p1, %p578_p0 }
  0x23   : > { %p581_p3 = pnand %p580_p2, %p574_p13 }
  0xf2   : > { %v350_v16 = vpop.f32.mrb[0].mxu0 }
  0xf3   : > { %v351_v18 = vadd.f32 %v479_v15, %v350_v16  ;;  %v514_v19 = vpop.f32.mrb[1].mxu0 }
  0xf5   : > { %v355_v20 = vadd.f32 %v354_v17, %v351_v18 }
  0xf7   : > { %v359_v21 = vsel %vm358_vm2, %v355_v20, 0.0 }
  0xf8   : > { %360 = vadd.xlane.f32.xlu0 %v359_v21 }
 0x185   : > { %v361_v22 = vpop.xlane.xlu0 %360 }
 0x186   : > { %v362_v23 = vmul.f32 0.03125, %v361_v22 }
 0x188   : > { %v363_v24 = vsub.f32 %v355_v20, %v362_v23 }
 0x18a   : > { %v364_v25 = vmul.f32 %v363_v24, %v363_v24 }
 0x18c   : > { %v365_v26 = vsel %vm358_vm2, %v364_v25, 0.0 }
 0x18d   : > { %366 = vadd.xlane.f32.xlu0 %v365_v26 }
 0x21a   : > { %v367_v27 = vpop.xlane.xlu0 %366 }
 0x21b   : > { %v368_v28 = vmul.f32 0.03125, %v367_v27 }
 0x21d   : > { %v369_v29 = vadd.f32 1e-12, %v368_v28 }
 0x21f   : > { %569 = vrsqrt.f32 %v369_v29 }
 0x229   : > { %v570_v30 = vpop.eup %569 }
 0x22a   : > { %v371_v32 = vmul.f32 %v570_v30, %v363_v24 }
 0x22c   : > { %v378_v34 = vmul.f32 %v481_v31, %v371_v32 }
 0x22e   : > { %v385_v35 = vadd.f32 %v482_v33, %v378_v34 }
 0x230   : > { %386 = vst.msk [vmem:[%s255_s12] sm:$0xff] %vm358_vm2, %v385_v35 }
 0x231   : > { %584 = shalt.err (!%p581_p3)
}
 0x232   : > { %s585_s20 = scalar_lea.hbm %s770_s16, 128  ;;  %s589_s9 = scalar_lea.hbm %s819_s6, 256 }
 0x233   : > { %p586_p4 = scmp.ne.s32.totalorder %s770_s16, %s585_s20  ;;  %p590_p9 = scmp.lt.u32.totalorder %s770_s16, %s819_s6 }
 0x234   : > { %p591_p10 = scmp.lt.u32.totalorder %s589_s9, %s585_s20  ;;  %p593_p12 = scmp.lt.u32.totalorder %s585_s20, %s770_s16 }
 0x235   : > { %p587_p7 = pnand %p586_p4, %p712_p5 }
 0x236   : > { %p592_p11 = por %p591_p10, %p590_p9 }
 0x237   : > { %p588_p8 = pneg %p587_p7 }
 0x238   : > { %p594_p13 = por %p593_p12, %p592_p11 }
 0x23a   : > { %p595_p0 = pnand %p594_p13, %p588_p8 }
 0x23c   : > { %598 = shalt.err (!%p595_p0)
}
 0x23d   : > { %527 = dma.vmem_to_hbm [thread:$0]  (%p712_p5), %s772_s13, 128, %s770_s16, %s388_s17  }
 0x23e PF: > { %p533_p1 = scmp.ge.s32.totalorder %s633_s24, 2  ;;  %s413_s12 = sand.u32 1, %s621_s21  }
 0x23f   : > { %s414_s14 = scalar_lea.sflag [#allocation3], %s413_s12 }
 0x240   : > { %p530_p2 = pnand %p533_p1, %p716_p6 }
 0x242   : > { %616 = dma.done.wait (!%p530_p2), %s414_s14, 128  }
 0x243   : > { %618 = vsyncadd (!%p530_p2), %s414_s14, 4294967168  ;;  %p16_p3 = scmp.ge.s32.totalorder %s699_s27, 4   ;;  %s822_s21 = smov %s625_s22 }
 0x244   : > { %s823_s22 = smov %s629_s23  ;;  %s824_s23 = smov %s710_s30 }
 0x245   : > { %s825_s24 = smov %s699_s27  ;;  %18 = sbr.rel (!%p16_p3) target bundleno = 3 (0x3), region = 82 }
 0x24c   :  { %419 = vsyncpa [#allocation3], 1 }
 0x24d   :  { %421 = vsyncpa [#allocation3 + $0x1], 1 }

</bundles_post_ra>
